<compile_context>
chip_gen: v7x
topology: tpu7x:2x2x1
jax: 0.10.0
libtpu: 0.0.40
codegen_flags: <defaults>
</compile_context>

<pallas_src>
import math

import jax
import jax.numpy as jnp
from jax.experimental import pallas as pl
from jax.experimental.pallas import tpu as pltpu


def _fused_affine_t_kernel(w_ref, b_ref, x_ref, o_ref):
    # y^T = W_fused^T @ x^T + b^T   -- lane dim is the batch tile (dense stores)
    y = jnp.dot(w_ref[...], x_ref[...], preferred_element_type=jnp.float32)
    o_ref[...] = (y + b_ref[...]).astype(o_ref.dtype)


def fuse_params(w1, b1, w2, b2):
    """Fuse the two affine layers once (hoisted out of the forward path).

    PyTorch convention: w1, w2 are (out, in); b1, b2 are (1, out) or (out,).
      y = (x @ W1^T + b1) @ W2^T + b2
        = x @ (W1^T W2^T) + (b1 W2^T + b2)
    Transposed (feature-major) form used by the kernel:
      y^T = (W2 W1) x^T + (W2 b1^T + b2^T)
    """
    w_fused_t = w2 @ w1                                        # (D_out, D_in)
    b_fused_t = w2 @ b1.reshape(-1, 1) + b2.reshape(-1, 1)     # (D_out, 1)
    return w_fused_t, b_fused_t


def simple_nn_forward(x, w_fused_t, b_fused_t, *, block_b=8192):
    """Forward pass of SimpleNN using pre-fused params.

    x:          (B, 10) float32
    w_fused_t:  (10, 10) float32  -- W2 @ W1
    b_fused_t:  (10, 1)  float32  -- W2 @ b1^T + b2^T
    Returns (B, 10) float32, equal to (x @ W1^T + b1) @ W2^T + b2.
    """
    B, d_in = x.shape
    d_out = w_fused_t.shape[0]

    # Batch tile: multiple of 128 (lane width), capped by block_b, and no
    # larger than the (lane-rounded) batch.
    block_b = max(128, (block_b // 128) * 128)
    b_lane = ((B + 127) // 128) * 128          # batch rounded up to lane width
    tb = min(block_b, b_lane)                  # multiple of 128
    b_pad = pl.cdiv(B, tb) * tb                # full blocks only
    grid = (b_pad // tb,)

    # Wrapper-side layout plumbing: pad batch, present x feature-major.
    if b_pad != B:
        x = jnp.pad(x, ((0, b_pad - B), (0, 0)))
    x_t = x.T                                  # (d_in, b_pad), lane = batch

    y_t = pl.pallas_call(
        _fused_affine_t_kernel,
        out_shape=jax.ShapeDtypeStruct((d_out, b_pad), jnp.float32),
        grid_spec=pl.GridSpec(
            grid=grid,
            in_specs=[
                pl.BlockSpec((d_out, d_in), lambda i: (0, 0)),   # W: resident
                pl.BlockSpec((d_out, 1), lambda i: (0, 0)),      # b: resident
                pl.BlockSpec((d_in, tb), lambda i: (0, i)),      # x^T: streamed
            ],
            out_specs=pl.BlockSpec((d_out, tb), lambda i: (0, i)),
        ),
        compiler_params=pltpu.CompilerParams(
            # Batch axis is embarrassingly parallel -> megacore-shard on v7x.
            dimension_semantics=("parallel",),
        ),
        cost_estimate=pl.CostEstimate(
            flops=2 * b_pad * d_in * d_out,
            transcendentals=0,
            bytes_accessed=4 * (b_pad * d_in + b_pad * d_out
                                + d_in * d_out + d_out),
        ),
    )(w_fused_t, b_fused_t, x_t)

    # Back to the caller's (B, 10) layout.
    return y_t[:, :B].T


def init_params(key):
    """Deterministic PyTorch-style init: U(-1/sqrt(fan_in), 1/sqrt(fan_in))."""
    k1, k2, k3, k4 = jax.random.split(key, 4)
    bound = 1.0 / math.sqrt(10.0)
    w1 = jax.random.uniform(k1, (10, 10), jnp.float32, -bound, bound)
    b1 = jax.random.uniform(k2, (1, 10), jnp.float32, -bound, bound)
    w2 = jax.random.uniform(k3, (10, 10), jnp.float32, -bound, bound)
    b2 = jax.random.uniform(k4, (1, 10), jnp.float32, -bound, bound)
    return w1, b1, w2, b2


if __name__ == "__main__":
    key = jax.random.PRNGKey(0)
    kx, kp = jax.random.split(key)

    batch = 300  # non-multiple of 128: exercises the pad + slice-back path
    x = jax.random.normal(kx, (batch, 10), dtype=jnp.float32)
    w1, b1, w2, b2 = init_params(kp)

    # Fusion hoisted out of the per-call path (done once).
    w_fused_t, b_fused_t = fuse_params(w1, b1, w2, b2)

    out = simple_nn_forward(x, w_fused_t, b_fused_t)
    jax.block_until_ready(out)

    # Reference: the original two chained affine layers in plain JAX.
    ref = (x @ w1.T + b1) @ w2.T + b2
    assert out.shape == (batch, 10)
    assert jnp.allclose(out, ref, atol=1e-4, rtol=1e-4)

    print("KERNEL_OK")
</pallas_src>

<mosaic_0001>
module attributes {stable_mosaic.version = 11 : i64} {
  func.func @_fused_affine_t_kernel(%arg0: i32, %arg1: memref<10x10xf32, #tpu.memory_space<vmem>>, %arg2: memref<10x1xf32, #tpu.memory_space<vmem>>, %arg3: memref<10x384xf32, #tpu.memory_space<vmem>>, %arg4: memref<10x384xf32, #tpu.memory_space<vmem>>) attributes {dimension_semantics = [#tpu.dimension_semantics<parallel>], iteration_bounds = array<i64: 1>, scalar_prefetch = 0 : i64, scratch_operands = 0 : i64, tpu.core_type = #tpu.core_type<tc>, window_params = [{pipeline_mode = #tpu.pipeline_mode<synchronous>, transform_indices = @transform_0, window_bounds = array<i64: 10, 10>}, {pipeline_mode = #tpu.pipeline_mode<synchronous>, transform_indices = @transform_1, window_bounds = array<i64: 10, 1>}, {transform_indices = @transform_2, window_bounds = array<i64: 10, 384>}, {transform_indices = @transform_3, window_bounds = array<i64: 10, 384>}]} {
    %c0 = arith.constant 0 : index
    %c0_0 = arith.constant 0 : index
    %0 = vector.load %arg1[%c0, %c0_0] : memref<10x10xf32, #tpu.memory_space<vmem>>, vector<10x10xf32>
    %c0_1 = arith.constant 0 : index
    %c0_2 = arith.constant 0 : index
    %1 = vector.load %arg3[%c0_1, %c0_2] : memref<10x384xf32, #tpu.memory_space<vmem>>, vector<10x384xf32>
    %cst = arith.constant dense<0.000000e+00> : vector<10x384xf32>
    %2 = tpu.matmul %0, %1, %cst {dimension_numbers = #tpu.dot_dimension_numbers<[1], [0], [0], [1], [0, 0, 1, 1], [], []>} : vector<10x10xf32>, vector<10x384xf32>, vector<10x384xf32> -> vector<10x384xf32>
    %c0_3 = arith.constant 0 : index
    %c0_4 = arith.constant 0 : index
    %3 = vector.load %arg2[%c0_3, %c0_4] : memref<10x1xf32, #tpu.memory_space<vmem>>, vector<10x1xf32>
    %4 = vector.broadcast %3 : vector<10x1xf32> to vector<10x384xf32>
    %5 = arith.addf %2, %4 : vector<10x384xf32>
    %c0_5 = arith.constant 0 : index
    %c0_6 = arith.constant 0 : index
    %6 = vector.load %arg4[%c0_5, %c0_6] : memref<10x384xf32, #tpu.memory_space<vmem>>, vector<10x384xf32>
    tpu.vector_store %arg4[%c0_5, %c0_6], %5 {strides = array<i32>} : memref<10x384xf32, #tpu.memory_space<vmem>>, vector<10x384xf32>,
    return
  }
  func.func @transform_0(%arg0: i32) -> (i32, i32) {
    %c0_i32 = arith.constant 0 : i32
    %c0_i32_0 = arith.constant 0 : i32
    %c0_i32_1 = arith.constant 0 : i32
    return %c0_i32, %c0_i32_0 : i32, i32
  }
  func.func @transform_1(%arg0: i32) -> (i32, i32) {
    %c0_i32 = arith.constant 0 : i32
    %c0_i32_0 = arith.constant 0 : i32
    %c0_i32_1 = arith.constant 0 : i32
    return %c0_i32, %c0_i32_0 : i32, i32
  }
  func.func @transform_2(%arg0: i32) -> (i32, i32) {
    %c0_i32 = arith.constant 0 : i32
    %c0_i32_0 = arith.constant 0 : i32
    return %c0_i32, %arg0 : i32, i32
  }
  func.func @transform_3(%arg0: i32) -> (i32, i32) {
    %c0_i32 = arith.constant 0 : i32
    %c0_i32_0 = arith.constant 0 : i32
    return %c0_i32, %arg0 : i32, i32
  }
}

</mosaic_0001>

<bundles_post_ra>
// kernel: tpu_custom_call.1
= control target key start
LH: loop header
LB: loop body
LE: loop exit
PB: predicated region body
PF: predicated region fallthrough
CT: control target
= control target key end

     0   :  { %8 = vsyncpa [#allocation3], 0  ;;  %s412_s0 = inlined_call_operand.vmem [shape: f32[10,10], index: 0, kind: input, shape index: {}]   ;;  %s413_s1 = inlined_call_operand.vmem [shape: f32[10,1], index: 1, kind: input, shape index: {}]   ;;  %s414_s2 = inlined_call_operand.hbm [shape: f32[10,384], index: 2, kind: input, shape index: {}]   ;;  %s415_s3 = inlined_call_operand.hbm [shape: f32[10,384], index: 3, kind: output, shape index: {}]  }
   0x1   :  { %9 = vsyncpa [#allocation4], 0  ;;  %s327_s12 = smov [#allocation2]   ;;  %s279_s16 = scalar_lea.hbm %s414_s2, 768 }
   0x2   :  { %s19_s13 = sshll.u32 %s327_s12, 4  ;;  %p280_p0 = scmp.ne.s32.totalorder %s414_s2, %s279_s16  ;;  %s20_s13 = int_to_ptr.vmem [resolvable:$true] %s19_s13 }
   0x3   :  { %p283_p1 = scmp.lt.u32.totalorder %s279_s16, %s414_s2 }
   0x5   :  { %p285_p2 = pnand %p283_p1, %p280_p0 }
   0x7   :  { %288 = shalt.err (!%p285_p2)
}
   0x8   :  { %s289_s21 = scalar_lea.vmem %s20_s13, 768  ;;  %p294_p4 = scmp.lt.s32.totalorder %s20_s13, %s20_s13 }
   0x9   :  { %p290_p3 = scmp.ne.s32.totalorder %s20_s13, %s289_s21  ;;  %p295_p5 = scmp.lt.s32.totalorder %s289_s21, %s289_s21 }
   0xb   :  { %p296_p6 = por %p295_p5, %p294_p4 }
   0xd   :  { %p297_p7 = pnand %p296_p6, %p290_p3 }
   0xf   :  { %300 = shalt.err (!%p297_p7)
}
  0x10   :  { %s328_s22 = smov 384   ;;  %s329_s23 = smov 24  }
  0x11   :  { %25 = dma.hbm_to_vmem [thread:$0]  %s414_s2, 768, %s20_s13, [#allocation3], %s328_s22, %s328_s22, %s329_s23  }
  0x12   :  { %323 = dma.done.wait [#allocation3], 768  }
  0x13   :  { %324 = vsyncadd [#allocation3], 4294966528  ;;  %v330_v0 = vmov 0.0   ;;  %v331_v1 = vmov 0   ;;  %vm56_vm0 = vcmask 1041408   ;;  %vm332_vm1 = vmmov 1  }
  0x14   :  { %130 = vmatprep.mubr.f32.mxu0 %v330_v0  ;;  %278 = vset.pattern.permute.xlu0 %v331_v1  ;;  %vm369_vm2 = vmpackc.low %vm56_vm0, %vm332_vm1  ;;  %v32_v3 = vld [vmem:[#allocation2 + $0x8] sm:$0xff]  ;;  %v35_v4 = vld [vmem:[#allocation2 + $0x20] sm:$0x3]  ;;  %vm49_vm3 = vcmask 80896  }
  0x15   :  { %v33_v5 = vld [vmem:[#allocation2 + $0x10] sm:$0xff]  ;;  %v259_v6 = vpack.c.bf16 %v35_v4, %v32_v3  ;;  %v36_v7 = vld [vmem:[#allocation2 + $0x28] sm:$0x3]  ;;  %v31_v8 = vld [vmem:[#allocation2] sm:$0xff] }
  0x16   :  { %v34_v9 = vld [vmem:[#allocation2 + $0x18] sm:$0x3]  ;;  %v265_v10 = vpack.c.bf16 %v36_v7, %v33_v5  ;;  %v29_v12 = vld [vmem:[%s412_s0] sm:$0xff]  ;;  %v30_v14 = vld [vmem:[%s412_s0 + $0x8] sm:$0x3]  ;;  %s333_s0 = smov [#allocation5]  }
  0x17   :  { %v262_v11 = vpack.c.bf16 %v34_v9, %v31_v8  ;;  %v37_v13 = vld [vmem:[%s413_s1] sm:$0xff]  ;;  %261 = vmatprep.subr.msk.bf16.mxu0 %vm369_vm2, %v259_v6  ;;  %256 = vmatprep.mubr.msk.f32.mxu1 %vm49_vm3, %v29_v12  ;;  %v38_v15 = vld [vmem:[%s413_s1 + $0x8] sm:$0x3]  ;;  %s229_s1 = sshll.u32 %s333_s0, 4  ;;  %s230_s1 = int_to_ptr.vmem [resolvable:$true] %s229_s1 }
  0x18   :  { %267 = vmatprep.subr.msk.bf16.mxu1 %vm369_vm2, %v265_v10  ;;  %41 = vperm.xlu0 %278, %v37_v13   ;;  %s301_s6 = scalar_lea.vmem %s230_s1, 768  ;;  %p306_p9 = scmp.lt.s32.totalorder %s230_s1, %s230_s1 }
  0x19   :  { %264 = vmatpush1.bf16.msk.msra.mxu0 %vm369_vm2, %v262_v11  ;;  %270 = vmatpush3.bf16.msk.msra.mxu1 %vm369_vm2, %v265_v10  ;;  %p302_p8 = scmp.ne.s32.totalorder %s230_s1, %s301_s6  ;;  %p307_p10 = scmp.lt.s32.totalorder %s301_s6, %s301_s6 }
  0x1b   :  { %p308_p11 = por %p307_p10, %p306_p9 }
  0x1c   :  { %243 = vmatmul.mubr.msk.f32.vlgmr.msra.gmra.mrb[0].mxu0 %vm49_vm3, %v29_v12  ;;  %257 = vmatmul.mubr.msk.f32.vlgmr.msra.gmra.mrb[0].mxu1 %vm49_vm3, %v30_v14 }
  0x1d   :  { %136 = vmatprep.mubr.f32.mxu0 %v330_v0  ;;  %46 = vperm.xlu0 %278, %v38_v15   ;;  %p309_p12 = pnand %p308_p11, %p302_p8 }
  0x20   :  { %244 = vmatmul.mubr.msk.f32.gmra.mrb[2].mxu0 %vm49_vm3, %v30_v14 }
  0x97   :  { %v42_v16 = vpop.permute.xlu0 %41 }
  0x9c   :  { %v47_v17 = vpop.permute.xlu0 %46 }
  0xef   :  { %v132_v18 = vpop.f32.mrb[0].mxu0  ;;  %v258_v20 = vpop.f32.mrb[0].mxu1 }
  0xf0   :  { %v133_v19 = vadd.f32 %v132_v18, %v42_v16  ;;  %v134_v21 = vpop.f32.mrb[1].mxu0  ;;  %v215_v22 = vadd.f32 %v258_v20, %v47_v17  ;;  %v209_v24 = vpop.f32.mrb[1].mxu1 }
  0xf1   :  { %v135_v23 = vadd.f32 %v134_v21, %v42_v16  ;;  %v210_v25 = vadd.f32 %v209_v24, %v42_v16 }
  0xf2   :  { %218 = vst [vmem:[#allocation5] sm:$0xff] %v133_v19  ;;  %223 = vst [vmem:[#allocation5 + $0x28] sm:$0x3] %v215_v22 }
  0xf3   :  { %219 = vst [vmem:[#allocation5 + $0x8] sm:$0xff] %v135_v23  ;;  %v138_v26 = vpop.f32.mrb[2].mxu0  ;;  %220 = vst [vmem:[#allocation5 + $0x10] sm:$0xff] %v210_v25 }
  0xf4   :  { %v139_v27 = vadd.f32 %v138_v26, %v47_v17  ;;  %v140_v28 = vpop.f32.mrb[3].mxu0 }
  0xf5   :  { %v141_v29 = vadd.f32 %v140_v28, %v47_v17 }
  0xf6   :  { %221 = vst [vmem:[#allocation5 + $0x18] sm:$0x3] %v139_v27 }
  0xf7   :  { %222 = vst [vmem:[#allocation5 + $0x20] sm:$0x3] %v141_v29 }
  0xf8   :  { %312 = shalt.err (!%p309_p12)
}
  0xf9   :  { %s313_s9 = scalar_lea.hbm %s415_s3, 768 }
  0xfa   :  { %p314_p13 = scmp.ne.s32.totalorder %s415_s3, %s313_s9  ;;  %p317_p0 = scmp.lt.u32.totalorder %s313_s9, %s415_s3 }
  0xfc   :  { %p319_p1 = pnand %p317_p0, %p314_p13 }
  0xfe   :  { %322 = shalt.err (!%p319_p1)
}
  0xff   :  { %235 = dma.vmem_to_hbm [thread:$0]  %s230_s1, 768, %s415_s3, [#allocation4], %s328_s22, %s328_s22, %s329_s23  }
 0x100   :  { %325 = dma.done.wait [#allocation4], 768  }
 0x101   :  { %326 = vsyncadd [#allocation4], 4294966528 }
 0x102   :  { %239 = vsyncpa [#allocation3], 1 }
 0x103   :  { %240 = vsyncpa [#allocation4], 1 }

</bundles_post_ra>
